<compile_context>
chip_gen: v5e
topology: v5e:2x2
jax: 0.10.0
libtpu: 0.0.40
codegen_flags: <defaults>
</compile_context>

<pallas_src>
import jax
import jax.numpy as jnp
from jax.experimental import pallas as pl
from jax.experimental.pallas import tpu as pltpu

INPUT_DIM = 42
HIDDEN_DIM = 128
LATENT_DIM = 32
IN_PAD = 128                 # input_dim padded to a full lane width
HEAD_DIM = 2 * LATENT_DIM    # mu || logvar width (before lane padding)
PVEC_W = 128                 # packed-parameter row width
ACT_W = 2 * IN_PAD           # fused activation slab width (x || eps_pad)
OUT_W = 2 * IN_PAD           # fused output slab width (recon || mu||logvar pad)
BN_EPS = 1e-5

# ---- row offsets inside the single stacked weight slab [424, 128] ----
ROW_W_ENC = 0                       # [128, 128]  (input rows 0:42 valid)
ROW_W_HEAD = ROW_W_ENC + IN_PAD     # [128, 128]  (cols 0:64 = mu||logvar, rest 0)
ROW_W_DEC1 = ROW_W_HEAD + HIDDEN_DIM  # [32, 128]
ROW_W_DEC2 = ROW_W_DEC1 + LATENT_DIM  # [128, 128] (cols 0:42 valid)
ROW_PVEC = ROW_W_DEC2 + HIDDEN_DIM    # [8, 128]   packed biases / BN params
WSLAB_ROWS = ROW_PVEC + 8             # = 424 (multiple of 8)

# rows within the packed [8, 128] parameter block
_ROW_B_ENC, _ROW_G_ENC, _ROW_BE_ENC, _ROW_B_HEAD = 0, 1, 2, 3
_ROW_B_DEC1, _ROW_G_DEC, _ROW_BE_DEC, _ROW_B_DEC2 = 4, 5, 6, 7


def _bn_train(h, gamma, beta):
    """BatchNorm1d training mode, single-pass stats -> affine scale/shift."""
    inv_n = 1.0 / h.shape[0]
    mean = jnp.sum(h, axis=0, keepdims=True) * inv_n
    mean_sq = jnp.sum(h * h, axis=0, keepdims=True) * inv_n
    var = jnp.maximum(mean_sq - mean * mean, 0.0)     # biased batch variance
    scale = gamma * jax.lax.rsqrt(var + BN_EPS)       # [1, H]
    shift = beta - mean * scale                       # [1, H]
    return h * scale + shift


def mlp_vae_kernel(act_ref, w_ref, out_ref):
    act = act_ref[...]                                # [B, 256]
    x = act[:, :IN_PAD]                               # [B, 128] (zero-padded x)
    eps = act[:, IN_PAD:IN_PAD + LATENT_DIM]          # [B, 32]

    pvec = w_ref[ROW_PVEC:ROW_PVEC + 8, :]            # [8, 128]
    b_enc = pvec[_ROW_B_ENC:_ROW_B_ENC + 1, :]
    g_enc = pvec[_ROW_G_ENC:_ROW_G_ENC + 1, :]
    be_enc = pvec[_ROW_BE_ENC:_ROW_BE_ENC + 1, :]
    b_head = pvec[_ROW_B_HEAD:_ROW_B_HEAD + 1, :]     # mu||logvar bias, lanes 64:128 zero
    b_dec1 = pvec[_ROW_B_DEC1:_ROW_B_DEC1 + 1, :]
    g_dec = pvec[_ROW_G_DEC:_ROW_G_DEC + 1, :]
    be_dec = pvec[_ROW_BE_DEC:_ROW_BE_DEC + 1, :]
    b_dec2 = pvec[_ROW_B_DEC2:_ROW_B_DEC2 + 1, :]

    # ---- encoder: Linear -> BatchNorm1d -> ReLU ----
    h = jnp.dot(x, w_ref[ROW_W_ENC:ROW_W_ENC + IN_PAD, :],
                preferred_element_type=jnp.float32) + b_enc
    h = jnp.maximum(_bn_train(h, g_enc, be_enc), 0.0)

    # ---- fused, lane-padded mu || logvar head (one MXU pass, N = 128) ----
    ml = jnp.dot(h, w_ref[ROW_W_HEAD:ROW_W_HEAD + HIDDEN_DIM, :],
                 preferred_element_type=jnp.float32) + b_head   # [B, 128]
    mu = ml[:, :LATENT_DIM]
    logvar = ml[:, LATENT_DIM:HEAD_DIM]

    # ---- reparameterize: z = mu + eps * exp(0.5 * logvar) ----
    std = jnp.exp(0.5 * logvar)
    z = mu + eps * std                                # [B, 32]

    # ---- decoder: Linear -> BatchNorm1d -> ReLU -> Linear ----
    d = jnp.dot(z, w_ref[ROW_W_DEC1:ROW_W_DEC1 + LATENT_DIM, :],
                preferred_element_type=jnp.float32) + b_dec1
    d = jnp.maximum(_bn_train(d, g_dec, be_dec), 0.0)
    recon = jnp.dot(d, w_ref[ROW_W_DEC2:ROW_W_DEC2 + HIDDEN_DIM, :],
                    preferred_element_type=jnp.float32) + b_dec2

    # both stores are 128-lane aligned, full-width (unmasked vst)
    out_ref[:, :IN_PAD] = recon                       # recon (valid lanes 0:42)
    out_ref[:, IN_PAD:] = ml                          # mu||logvar (lanes 0:64), zeros after


def init_params(key, input_dim=INPUT_DIM, hidden_dim=HIDDEN_DIM, latent_dim=LATENT_DIM):
    """Deterministic PyTorch-style (uniform +-1/sqrt(fan_in)) init, weights pre-transposed."""
    ks = jax.random.split(key, 8)

    def linear(kw, kb, fan_in, fan_out):
        bound = 1.0 / jnp.sqrt(jnp.float32(fan_in))
        w = jax.random.uniform(kw, (fan_in, fan_out), jnp.float32, -bound, bound)
        b = jax.random.uniform(kb, (1, fan_out), jnp.float32, -bound, bound)
        return w, b

    w_enc, b_enc = linear(ks[0], ks[1], input_dim, hidden_dim)
    w_mu, b_mu = linear(ks[2], ks[3], hidden_dim, latent_dim)
    w_lv, b_lv = linear(ks[4], ks[5], hidden_dim, latent_dim)
    w_dec1, b_dec1 = linear(ks[6], ks[7], latent_dim, hidden_dim)
    kd2w, kd2b = jax.random.split(jax.random.fold_in(key, 99))
    w_dec2, b_dec2 = linear(kd2w, kd2b, hidden_dim, input_dim)

    g_enc = jnp.ones((1, hidden_dim), jnp.float32)
    be_enc = jnp.zeros((1, hidden_dim), jnp.float32)
    g_dec = jnp.ones((1, hidden_dim), jnp.float32)
    be_dec = jnp.zeros((1, hidden_dim), jnp.float32)

    return dict(
        w_enc=w_enc, b_enc=b_enc, g_enc=g_enc, be_enc=be_enc,
        w_mu=w_mu, b_mu=b_mu, w_lv=w_lv, b_lv=b_lv,
        w_dec1=w_dec1, b_dec1=b_dec1, g_dec=g_dec, be_dec=be_dec,
        w_dec2=w_dec2, b_dec2=b_dec2,
    )


def pack_params(params):
    """Pad / fuse / pack ALL raw params into one [424, 128] slab (done ONCE, off the hot path)."""
    def pad_block(w, rows):
        out = jnp.zeros((rows, PVEC_W), jnp.float32)
        return out.at[:w.shape[0], :w.shape[1]].set(w)

    w_enc = pad_block(params["w_enc"], IN_PAD)                                     # [128,128]
    w_head = pad_block(jnp.concatenate([params["w_mu"], params["w_lv"]], axis=1),  # [128,128]
                       HIDDEN_DIM)
    w_dec1 = params["w_dec1"]                                                      # [32,128]
    w_dec2 = pad_block(params["w_dec2"], HIDDEN_DIM)                               # [128,128]

    def row(v):
        return jnp.zeros((1, PVEC_W), jnp.float32).at[:, :v.shape[1]].set(v)

    pvec = jnp.concatenate([
        row(params["b_enc"]),
        row(params["g_enc"]),
        row(params["be_enc"]),
        row(jnp.concatenate([params["b_mu"], params["b_lv"]], axis=1)),
        row(params["b_dec1"]),
        row(params["g_dec"]),
        row(params["be_dec"]),
        row(params["b_dec2"]),
    ], axis=0)                                                                     # [8, 128]

    wslab = jnp.concatenate([w_enc, w_head, w_dec1, w_dec2, pvec], axis=0)         # [424, 128]
    assert wslab.shape == (WSLAB_ROWS, PVEC_W)
    return wslab


@jax.jit
def mlp_vae_forward(x, eps, wslab):
    """x: [B, INPUT_DIM] f32, eps: [B, LATENT_DIM] f32, wslab: [424, 128] f32.
    Returns (recon, mu, logvar)."""
    B = x.shape[0]

    # one fused activation slab: x in lanes 0:128 (zero-padded), eps in lanes 128:160
    act = jnp.zeros((B, ACT_W), jnp.float32)
    act = act.at[:, :INPUT_DIM].set(x)
    act = act.at[:, IN_PAD:IN_PAD + LATENT_DIM].set(eps)

    flops = 2 * B * (IN_PAD * HIDDEN_DIM + HIDDEN_DIM * PVEC_W
                     + LATENT_DIM * HIDDEN_DIM + HIDDEN_DIM * IN_PAD)
    bytes_accessed = 4 * (int(act.size) + WSLAB_ROWS * PVEC_W + B * OUT_W)
    vmem = pl.BlockSpec(memory_space=pltpu.MemorySpace.VMEM)

    out = pl.pallas_call(
        mlp_vae_kernel,
        out_shape=jax.ShapeDtypeStruct((B, OUT_W), jnp.float32),
        in_specs=[vmem, vmem],
        out_specs=vmem,
        cost_estimate=pl.CostEstimate(
            flops=flops,
            transcendentals=B * LATENT_DIM + 2 * HIDDEN_DIM,   # exp + rsqrt
            bytes_accessed=bytes_accessed,
        ),
    )(act, wslab)

    recon = out[:, :INPUT_DIM]
    mu = out[:, IN_PAD:IN_PAD + LATENT_DIM]
    logvar = out[:, IN_PAD + LATENT_DIM:IN_PAD + HEAD_DIM]
    return recon, mu, logvar


# ---------- pure-JAX reference (mirrors the PyTorch module) ----------
def _bn_ref(h, gamma, beta):
    mean = jnp.mean(h, axis=0, keepdims=True)
    var = jnp.mean((h - mean) ** 2, axis=0, keepdims=True)
    return (h - mean) / jnp.sqrt(var + BN_EPS) * gamma + beta


def mlp_vae_reference(x, params, eps):
    h = jnp.maximum(_bn_ref(x @ params["w_enc"] + params["b_enc"],
                            params["g_enc"], params["be_enc"]), 0.0)
    mu = h @ params["w_mu"] + params["b_mu"]
    logvar = h @ params["w_lv"] + params["b_lv"]
    z = mu + eps * jnp.exp(0.5 * logvar)
    d = jnp.maximum(_bn_ref(z @ params["w_dec1"] + params["b_dec1"],
                            params["g_dec"], params["be_dec"]), 0.0)
    recon = d @ params["w_dec2"] + params["b_dec2"]
    return recon, mu, logvar


if __name__ == "__main__":
    key = jax.random.PRNGKey(0)
    k_param, k_x, k_eps = jax.random.split(key, 3)

    B = 8  # BatchNorm1d (training mode) needs batch > 1
    x = jax.random.normal(k_x, (B, INPUT_DIM), jnp.float32)
    params = init_params(k_param)
    eps = jax.random.normal(k_eps, (B, LATENT_DIM), jnp.float32)

    # pack once, outside the per-call path
    wslab = jax.device_put(pack_params(params))

    recon, mu, logvar = mlp_vae_forward(x, eps, wslab)
    jax.block_until_ready((recon, mu, logvar))

    assert recon.shape == (B, INPUT_DIM)
    assert mu.shape == (B, LATENT_DIM)
    assert logvar.shape == (B, LATENT_DIM)

    r_ref, m_ref, lv_ref = mlp_vae_reference(x, params, eps)
    assert jnp.allclose(recon, r_ref, atol=1e-4, rtol=1e-4)
    assert jnp.allclose(mu, m_ref, atol=1e-4, rtol=1e-4)
    assert jnp.allclose(logvar, lv_ref, atol=1e-4, rtol=1e-4)

    print("KERNEL_OK")
</pallas_src>

<mosaic_0001>
module attributes {stable_mosaic.version = 11 : i64} {
  func.func @mlp_vae_kernel(%arg0: memref<8x256xf32, #tpu.memory_space<vmem>>, %arg1: memref<424x128xf32, #tpu.memory_space<vmem>>, %arg2: memref<8x256xf32, #tpu.memory_space<vmem>>) attributes {dimension_semantics = [], scalar_prefetch = 0 : i64, scratch_operands = 0 : i64, tpu.core_type = #tpu.core_type<tc>} {
    %c0 = arith.constant 0 : index
    %c0_0 = arith.constant 0 : index
    %0 = vector.load %arg0[%c0, %c0_0] : memref<8x256xf32, #tpu.memory_space<vmem>>, vector<8x256xf32>
    %1 = vector.extract_strided_slice %0 {offsets = [0, 0], sizes = [8, 128], strides = [1, 1]} : vector<8x256xf32> to vector<8x128xf32>
    %2 = vector.extract_strided_slice %0 {offsets = [0, 128], sizes = [8, 32], strides = [1, 1]} : vector<8x256xf32> to vector<8x32xf32>
    %c416 = arith.constant 416 : index
    %c0_1 = arith.constant 0 : index
    %3 = vector.load %arg1[%c416, %c0_1] : memref<424x128xf32, #tpu.memory_space<vmem>>, vector<8x128xf32>
    %4 = vector.extract_strided_slice %3 {offsets = [0, 0], sizes = [1, 128], strides = [1, 1]} : vector<8x128xf32> to vector<1x128xf32>
    %5 = vector.extract_strided_slice %3 {offsets = [1, 0], sizes = [1, 128], strides = [1, 1]} : vector<8x128xf32> to vector<1x128xf32>
    %6 = vector.extract_strided_slice %3 {offsets = [2, 0], sizes = [1, 128], strides = [1, 1]} : vector<8x128xf32> to vector<1x128xf32>
    %7 = vector.extract_strided_slice %3 {offsets = [3, 0], sizes = [1, 128], strides = [1, 1]} : vector<8x128xf32> to vector<1x128xf32>
    %8 = vector.extract_strided_slice %3 {offsets = [4, 0], sizes = [1, 128], strides = [1, 1]} : vector<8x128xf32> to vector<1x128xf32>
    %9 = vector.extract_strided_slice %3 {offsets = [5, 0], sizes = [1, 128], strides = [1, 1]} : vector<8x128xf32> to vector<1x128xf32>
    %10 = vector.extract_strided_slice %3 {offsets = [6, 0], sizes = [1, 128], strides = [1, 1]} : vector<8x128xf32> to vector<1x128xf32>
    %11 = vector.extract_strided_slice %3 {offsets = [7, 0], sizes = [1, 128], strides = [1, 1]} : vector<8x128xf32> to vector<1x128xf32>
    %c0_2 = arith.constant 0 : index
    %c0_3 = arith.constant 0 : index
    %12 = vector.load %arg1[%c0_2, %c0_3] : memref<424x128xf32, #tpu.memory_space<vmem>>, vector<128x128xf32>
    %cst = arith.constant dense<0.000000e+00> : vector<8x128xf32>
    %13 = tpu.matmul %1, %12, %cst {dimension_numbers = #tpu.dot_dimension_numbers<[1], [0], [0], [1], [0, 0, 1, 1], [], []>} : vector<8x128xf32>, vector<128x128xf32>, vector<8x128xf32> -> vector<8x128xf32>
    %14 = vector.broadcast %4 : vector<1x128xf32> to vector<8x128xf32>
    %15 = arith.addf %13, %14 : vector<8x128xf32>
    %cst_4 = arith.constant dense<0.000000e+00> : vector<128xf32>
    %16 = vector.multi_reduction <add>, %15, %cst_4 [0] : vector<8x128xf32> to vector<128xf32>
    %17 = vector.shape_cast %16 : vector<128xf32> to vector<1x128xf32>
    %cst_5 = arith.constant 1.250000e-01 : f32
    %18 = vector.broadcast %cst_5 : f32 to vector<1x128xf32>
    %19 = arith.mulf %17, %18 : vector<1x128xf32>
    %20 = arith.mulf %15, %15 : vector<8x128xf32>
    %cst_6 = arith.constant dense<0.000000e+00> : vector<128xf32>
    %21 = vector.multi_reduction <add>, %20, %cst_6 [0] : vector<8x128xf32> to vector<128xf32>
    %22 = vector.shape_cast %21 : vector<128xf32> to vector<1x128xf32>
    %cst_7 = arith.constant 1.250000e-01 : f32
    %23 = vector.broadcast %cst_7 : f32 to vector<1x128xf32>
    %24 = arith.mulf %22, %23 : vector<1x128xf32>
    %25 = arith.mulf %19, %19 : vector<1x128xf32>
    %26 = arith.subf %24, %25 : vector<1x128xf32>
    %cst_8 = arith.constant 0.000000e+00 : f32
    %27 = vector.broadcast %cst_8 : f32 to vector<1x128xf32>
    %28 = arith.maximumf %26, %27 : vector<1x128xf32>
    %cst_9 = arith.constant 9.99999974E-6 : f32
    %29 = vector.broadcast %cst_9 : f32 to vector<1x128xf32>
    %30 = arith.addf %28, %29 : vector<1x128xf32>
    %31 = math.rsqrt %30 : vector<1x128xf32>
    %32 = arith.mulf %5, %31 : vector<1x128xf32>
    %33 = arith.mulf %19, %32 : vector<1x128xf32>
    %34 = arith.subf %6, %33 : vector<1x128xf32>
    %35 = vector.broadcast %32 : vector<1x128xf32> to vector<8x128xf32>
    %36 = arith.mulf %15, %35 : vector<8x128xf32>
    %37 = vector.broadcast %34 : vector<1x128xf32> to vector<8x128xf32>
    %38 = arith.addf %36, %37 : vector<8x128xf32>
    %cst_10 = arith.constant 0.000000e+00 : f32
    %39 = vector.broadcast %cst_10 : f32 to vector<8x128xf32>
    %40 = arith.maximumf %38, %39 : vector<8x128xf32>
    %c128 = arith.constant 128 : index
    %c0_11 = arith.constant 0 : index
    %41 = vector.load %arg1[%c128, %c0_11] : memref<424x128xf32, #tpu.memory_space<vmem>>, vector<128x128xf32>
    %cst_12 = arith.constant dense<0.000000e+00> : vector<8x128xf32>
    %42 = tpu.matmul %40, %41, %cst_12 {dimension_numbers = #tpu.dot_dimension_numbers<[1], [0], [0], [1], [0, 0, 1, 1], [], []>} : vector<8x128xf32>, vector<128x128xf32>, vector<8x128xf32> -> vector<8x128xf32>
    %43 = vector.broadcast %7 : vector<1x128xf32> to vector<8x128xf32>
    %44 = arith.addf %42, %43 : vector<8x128xf32>
    %45 = vector.extract_strided_slice %44 {offsets = [0, 0], sizes = [8, 32], strides = [1, 1]} : vector<8x128xf32> to vector<8x32xf32>
    %46 = vector.extract_strided_slice %44 {offsets = [0, 32], sizes = [8, 32], strides = [1, 1]} : vector<8x128xf32> to vector<8x32xf32>
    %cst_13 = arith.constant 5.000000e-01 : f32
    %47 = vector.broadcast %cst_13 : f32 to vector<8x32xf32>
    %48 = arith.mulf %47, %46 : vector<8x32xf32>
    %49 = math.exp %48 : vector<8x32xf32>
    %50 = arith.mulf %2, %49 : vector<8x32xf32>
    %51 = arith.addf %45, %50 : vector<8x32xf32>
    %c256 = arith.constant 256 : index
    %c0_14 = arith.constant 0 : index
    %52 = vector.load %arg1[%c256, %c0_14] : memref<424x128xf32, #tpu.memory_space<vmem>>, vector<32x128xf32>
    %cst_15 = arith.constant dense<0.000000e+00> : vector<8x128xf32>
    %53 = tpu.matmul %51, %52, %cst_15 {dimension_numbers = #tpu.dot_dimension_numbers<[1], [0], [0], [1], [0, 0, 1, 1], [], []>} : vector<8x32xf32>, vector<32x128xf32>, vector<8x128xf32> -> vector<8x128xf32>
    %54 = vector.broadcast %8 : vector<1x128xf32> to vector<8x128xf32>
    %55 = arith.addf %53, %54 : vector<8x128xf32>
    %cst_16 = arith.constant dense<0.000000e+00> : vector<128xf32>
    %56 = vector.multi_reduction <add>, %55, %cst_16 [0] : vector<8x128xf32> to vector<128xf32>
    %57 = vector.shape_cast %56 : vector<128xf32> to vector<1x128xf32>
    %cst_17 = arith.constant 1.250000e-01 : f32
    %58 = vector.broadcast %cst_17 : f32 to vector<1x128xf32>
    %59 = arith.mulf %57, %58 : vector<1x128xf32>
    %60 = arith.mulf %55, %55 : vector<8x128xf32>
    %cst_18 = arith.constant dense<0.000000e+00> : vector<128xf32>
    %61 = vector.multi_reduction <add>, %60, %cst_18 [0] : vector<8x128xf32> to vector<128xf32>
    %62 = vector.shape_cast %61 : vector<128xf32> to vector<1x128xf32>
    %cst_19 = arith.constant 1.250000e-01 : f32
    %63 = vector.broadcast %cst_19 : f32 to vector<1x128xf32>
    %64 = arith.mulf %62, %63 : vector<1x128xf32>
    %65 = arith.mulf %59, %59 : vector<1x128xf32>
    %66 = arith.subf %64, %65 : vector<1x128xf32>
    %cst_20 = arith.constant 0.000000e+00 : f32
    %67 = vector.broadcast %cst_20 : f32 to vector<1x128xf32>
    %68 = arith.maximumf %66, %67 : vector<1x128xf32>
    %cst_21 = arith.constant 9.99999974E-6 : f32
    %69 = vector.broadcast %cst_21 : f32 to vector<1x128xf32>
    %70 = arith.addf %68, %69 : vector<1x128xf32>
    %71 = math.rsqrt %70 : vector<1x128xf32>
    %72 = arith.mulf %9, %71 : vector<1x128xf32>
    %73 = arith.mulf %59, %72 : vector<1x128xf32>
    %74 = arith.subf %10, %73 : vector<1x128xf32>
    %75 = vector.broadcast %72 : vector<1x128xf32> to vector<8x128xf32>
    %76 = arith.mulf %55, %75 : vector<8x128xf32>
    %77 = vector.broadcast %74 : vector<1x128xf32> to vector<8x128xf32>
    %78 = arith.addf %76, %77 : vector<8x128xf32>
    %cst_22 = arith.constant 0.000000e+00 : f32
    %79 = vector.broadcast %cst_22 : f32 to vector<8x128xf32>
    %80 = arith.maximumf %78, %79 : vector<8x128xf32>
    %c288 = arith.constant 288 : index
    %c0_23 = arith.constant 0 : index
    %81 = vector.load %arg1[%c288, %c0_23] : memref<424x128xf32, #tpu.memory_space<vmem>>, vector<128x128xf32>
    %cst_24 = arith.constant dense<0.000000e+00> : vector<8x128xf32>
    %82 = tpu.matmul %80, %81, %cst_24 {dimension_numbers = #tpu.dot_dimension_numbers<[1], [0], [0], [1], [0, 0, 1, 1], [], []>} : vector<8x128xf32>, vector<128x128xf32>, vector<8x128xf32> -> vector<8x128xf32>
    %83 = vector.broadcast %11 : vector<1x128xf32> to vector<8x128xf32>
    %84 = arith.addf %82, %83 : vector<8x128xf32>
    %c0_25 = arith.constant 0 : index
    %c0_26 = arith.constant 0 : index
    %85 = vector.load %arg2[%c0_25, %c0_26] : memref<8x256xf32, #tpu.memory_space<vmem>>, vector<8x128xf32>
    tpu.vector_store %arg2[%c0_25, %c0_26], %84 {strides = array<i32>} : memref<8x256xf32, #tpu.memory_space<vmem>>, vector<8x128xf32>,
    %c0_27 = arith.constant 0 : index
    %c128_28 = arith.constant 128 : index
    %86 = vector.load %arg2[%c0_27, %c128_28] : memref<8x256xf32, #tpu.memory_space<vmem>>, vector<8x128xf32>
    tpu.vector_store %arg2[%c0_27, %c128_28], %44 {strides = array<i32>} : memref<8x256xf32, #tpu.memory_space<vmem>>, vector<8x128xf32>,
    return
  }
}

</mosaic_0001>

<bundles_post_ra>
// kernel: mlp_vae_forward.1
= control target key start
LH: loop header
LB: loop body
LE: loop exit
PB: predicated region body
PF: predicated region fallthrough
CT: control target
= control target key end

     0   :  { %7 = vsyncpa [#allocation3], 0  ;;  %s303_s12 = smov [#allocation2]   ;;  %s304_s14 = smov 128   ;;  %s347_s0 = inlined_call_operand.vmem [shape: f32[8,256], index: 0, kind: input, shape index: {}]   ;;  %s348_s1 = inlined_call_operand.hbm [shape: f32[424,128], index: 1, kind: input, shape index: {}]   ;;  %s349_s2 = inlined_call_operand.vmem [shape: f32[8,256], index: 2, kind: output, shape index: {}]  }
   0x1   :  { %s14_s11 = sshll.u32 %s348_s1, 4  ;;  %s16_s13 = sshll.u32 %s303_s12, 4  ;;  %s15_s11 = int_to_ptr.hbm [resolvable:$true] %s14_s11  ;;  %s17_s13 = int_to_ptr.vmem [resolvable:$true] %s16_s13 }
   0x2   :  { %s305_s15 = smov 8  }
   0x3   :  { %22 = dma.hbm_to_vmem [thread:$0]  %s15_s11, 6784, %s17_s13, [#allocation3], %s304_s14, %s304_s14, %s305_s15  }
   0x4   :  { %301 = dma.done.wait [#allocation3], 6784  }
   0x5   :  { %302 = vsyncadd [#allocation3], 4294960512  ;;  %v45_v0 = vld [vmem:[#allocation2 + $0x78] sm:$0xff]  ;;  %v44_v1 = vld [vmem:[#allocation2 + $0x70] sm:$0xff]  ;;  %s306_s19 = smov 96   ;;  %vm158_vm3 = vcmask 261120  }
   0x6   :  { %47 = vmatpush.msra.mxu0 %v45_v0  ;;  %v43_v2 = vld [vmem:[#allocation2 + $0x68] sm:$0xff]  ;;  %v42_v3 = vld [vmem:[#allocation2 + $0x60] sm:$0xff]  ;;  %v41_v4 = vld [vmem:[#allocation2 + $0x58] sm:$0xff] }
   0x7   :  { %v40_v5 = vld [vmem:[#allocation2 + $0x50] sm:$0xff]  ;;  %v39_v6 = vld [vmem:[#allocation2 + $0x48] sm:$0xff]  ;;  %v38_v7 = vld [vmem:[#allocation2 + $0x40] sm:$0xff] }
   0x8   :  { %48 = vmatpush.msra.mxu0 %v44_v1  ;;  %v37_v8 = vld [vmem:[#allocation2 + $0x38] sm:$0xff]  ;;  %v36_v9 = vld [vmem:[#allocation2 + $0x30] sm:$0xff]  ;;  %v35_v10 = vld [vmem:[#allocation2 + $0x28] sm:$0xff] }
   0x9   :  { %v34_v11 = vld [vmem:[#allocation2 + $0x20] sm:$0xff]  ;;  %v33_v12 = vld [vmem:[#allocation2 + $0x18] sm:$0xff]  ;;  %v32_v13 = vld [vmem:[#allocation2 + $0x10] sm:$0xff] }
   0xa   :  { %49 = vmatpush.msra.mxu0 %v43_v2  ;;  %v31_v14 = vld [vmem:[#allocation2 + $0x8] sm:$0xff]  ;;  %v30_v15 = vld [vmem:[#allocation2] sm:$0xff]  ;;  %v122_v17 = vld [vmem:[#allocation2 + $0xf8] sm:$0xff] }
   0xb   :  { %v27_v16 = vld [vmem:[%s347_s0] sm:$0xff]  ;;  %v121_v18 = vld [vmem:[#allocation2 + $0xf0] sm:$0xff]  ;;  %124 = vmatpush.msra.mxu1 %v122_v17  ;;  %v120_v19 = vld [vmem:[#allocation2 + $0xe8] sm:$0xff] }
   0xc   :  { %50 = vmatpush.msra.mxu0 %v42_v3  ;;  %v119_v20 = vld [vmem:[#allocation2 + $0xe0] sm:$0xff]  ;;  %v118_v21 = vld [vmem:[#allocation2 + $0xd8] sm:$0xff]  ;;  %v117_v22 = vld [vmem:[#allocation2 + $0xd0] sm:$0xff] }
   0xd   :  { %125 = vmatpush.msra.mxu1 %v121_v18  ;;  %v116_v23 = vld [vmem:[#allocation2 + $0xc8] sm:$0xff]  ;;  %v328_v24 = vld [vmem:[#allocation2 + $0x1a0] sm:$0xff]  ;;  %v114_v27 = vld [vmem:[#allocation2 + $0xb8] sm:$0xff] }
   0xe   :  { %51 = vmatpush.msra.mxu0 %v41_v4  ;;  %v115_v25 = vld [vmem:[#allocation2 + $0xc0] sm:$0xff]  ;;  %v46_v26 = vperm.slane %v328_v24, 0  ;;  %v113_v28 = vld [vmem:[#allocation2 + $0xb0] sm:$0xff]  ;;  %v112_v31 = vld [vmem:[#allocation2 + $0xa8] sm:$0xff] }
   0xf   :  { %126 = vmatpush.msra.mxu1 %v120_v19  ;;  %v111_v34 = vld [vmem:[#allocation2 + $0xa0] sm:$0xff]  ;;  %v110_v37 = vld [vmem:[#allocation2 + $0x98] sm:$0xff]  ;;  %v109_v40 = vld [vmem:[#allocation2 + $0x90] sm:$0xff] }
  0x10   :  { %52 = vmatpush.msra.mxu0 %v40_v5  ;;  %v108_v43 = vld [vmem:[#allocation2 + $0x88] sm:$0xff]  ;;  %v107_v45 = vld [vmem:[#allocation2 + $0x80] sm:$0xff] }
  0x11   :  { %127 = vmatpush.msra.mxu1 %v119_v20  ;;  %v153_v17 = vld [vmem:[#allocation2 + $0x100] sm:$0xff]  ;;  %v28_v18 = vld [vmem:[%s347_s0 + $0x8] sm:$0xff] }
  0x12   :  { %53 = vmatpush.msra.mxu0 %v39_v6 }
  0x13   :  { %128 = vmatpush.msra.mxu1 %v118_v21 }
  0x14   :  { %54 = vmatpush.msra.mxu0 %v38_v7 }
  0x15   :  { %129 = vmatpush.msra.mxu1 %v117_v22  ;;  %v237_v22 = vld [vmem:[#allocation2 + $0x198] sm:$0xff] }
  0x16   :  { %55 = vmatpush.msra.mxu0 %v37_v8  ;;  %v156_v8 = vld [vmem:[#allocation2 + $0x118] sm:$0xff]  ;;  %239 = vmatpush.msra.mxu3 %v237_v22 }
  0x17   :  { %130 = vmatpush.msra.mxu1 %v116_v23  ;;  %174 = vmatpush.msra.mxu2 %v156_v8  ;;  %v236_v23 = vld [vmem:[#allocation2 + $0x190] sm:$0xff] }
  0x18   :  { %56 = vmatpush.msra.mxu0 %v36_v9  ;;  %v123_v9 = vperm.slane %v328_v24, 3  ;;  %240 = vmatpush.msra.mxu3 %v236_v23 }
  0x19   :  { %131 = vmatpush.msra.mxu1 %v115_v25  ;;  %v235_v25 = vld [vmem:[#allocation2 + $0x188] sm:$0xff] }
  0x1a   :  { %57 = vmatpush.msra.mxu0 %v35_v10  ;;  %241 = vmatpush.msra.mxu3 %v235_v25 }
  0x1b   :  { %132 = vmatpush.msra.mxu1 %v114_v27  ;;  %v233_v27 = vld [vmem:[#allocation2 + $0x178] sm:$0xff] }
  0x1c   :  { %58 = vmatpush.msra.mxu0 %v34_v11 }
  0x1d   :  { %133 = vmatpush.msra.mxu1 %v113_v28  ;;  %v232_v28 = vld [vmem:[#allocation2 + $0x170] sm:$0xff] }
  0x1e   :  { %59 = vmatpush.msra.mxu0 %v33_v12 }
  0x1f   :  { %134 = vmatpush.msra.mxu1 %v112_v31  ;;  %v157_v31 = vperm.slane %v328_v24, 4 }
  0x20   :  { %60 = vmatpush.msra.mxu0 %v32_v13 }
  0x21   :  { %135 = vmatpush.msra.mxu1 %v111_v34 }
  0x22   :  { %61 = vmatpush.msra.mxu0 %v31_v14 }
  0x23   :  { %136 = vmatpush.msra.mxu1 %v110_v37 }
  0x24   :  { %62 = vmatpush.msra.mxu0 %v30_v15  ;;  %v155_v15 = vld [vmem:[#allocation2 + $0x110] sm:$0xff] }
  0x25   :  { %63 = vmatmul.f32.vlgmr.msra.gmra.mxu0 %v27_v16  ;;  %137 = vmatpush.msra.mxu1 %v109_v40  ;;  %v154_v16 = vld [vmem:[#allocation2 + $0x108] sm:$0xff] }
  0x26   :  { %175 = vmatpush.msra.mxu2 %v155_v15 }
  0x27   :  { %138 = vmatpush.msra.mxu1 %v108_v43 }
  0x28   :  { %176 = vmatpush.msra.mxu2 %v154_v16 }
  0x29   :  { %139 = vmatpush.msra.mxu1 %v107_v45  ;;  %v224_v45 = vld [vmem:[#allocation2 + $0x130] sm:$0xff] }
  0x2a   :  { %177 = vmatpush.msra.mxu2 %v153_v17 }
  0xa2   :  { %v64_v29 = vpop.f32.mrf.mxu0 }
  0xa3   :  { %v65_v30 = vadd.f32 %v64_v29, %v46_v26  ;;  %v234_v26 = vld [vmem:[#allocation2 + $0x180] sm:$0xff]  ;;  %v231_v29 = vld [vmem:[#allocation2 + $0x168] sm:$0xff] }
  0xa4   :  { %242 = vmatpush.msra.mxu3 %v234_v26 }
  0xa5   :  { %v67_v32 = vrot.slane %v65_v30, 4  ;;  %v74_v33 = vmul.f32 %v65_v30, %v65_v30 }
  0xa6   :  { %243 = vmatpush.msra.mxu3 %v233_v27 }
  0xa7   :  { %v68_v35 = vadd.f32 %v67_v32, %v65_v30  ;;  %v75_v36 = vrot.slane %v74_v33, 4  ;;  %v229_v32 = vld [vmem:[#allocation2 + $0x158] sm:$0xff] }
  0xa8   :  { %244 = vmatpush.msra.mxu3 %v232_v28 }
  0xa9   :  { %v69_v38 = vrot.slane %v68_v35, 2  ;;  %v76_v39 = vadd.f32 %v75_v36, %v74_v33  ;;  %v228_v33 = vld [vmem:[#allocation2 + $0x150] sm:$0xff]  ;;  %v227_v36 = vld [vmem:[#allocation2 + $0x148] sm:$0xff] }
  0xaa   :  { %245 = vmatpush.msra.mxu3 %v231_v29 }
  0xab   :  { %v70_v41 = vadd.f32 %v69_v38, %v68_v35  ;;  %v77_v42 = vrot.slane %v76_v39, 2 }
  0xad   :  { %v78_v44 = vadd.f32 %v77_v42, %v76_v39  ;;  %v71_v46 = vrot.slane %v70_v41, 1  ;;  %v226_v39 = vld [vmem:[#allocation2 + $0x140] sm:$0xff]  ;;  %v225_v42 = vld [vmem:[#allocation2 + $0x138] sm:$0xff] }
  0xaf   :  { %v79_v47 = vrot.slane %v78_v44, 1  ;;  %v72_v48 = vadd.f32 %v71_v46, %v70_v41 }
  0xb1   :  { %v80_v49 = vadd.f32 %v79_v47, %v78_v44  ;;  %v73_v50 = vmul.f32 0.125, %v72_v48  ;;  %v223_v48 = vld [vmem:[#allocation2 + $0x128] sm:$0xff] }
  0xb3   :  { %v81_v51 = vmul.f32 0.125, %v80_v49  ;;  %v82_v52 = vmul.f32 %v73_v50, %v73_v50 }
  0xb5   :  { %v83_v53 = vsub.f32 %v81_v51, %v82_v52 }
  0xb7   :  { %v84_v54 = vmax.f32 %v83_v53, 0.0 }
  0xb9   :  { %v85_v55 = vadd.f32 1e-05, %v84_v54 }
  0xbb   :  { %271 = vrsqrt.f32 %v85_v55  ;;  %vm92_vm1 = vweird.f32 %v85_v55 }
  0xc1   :  { %v272_v56 = vpop.eup %271 }
  0xc2   :  { %v87_v57 = vmul.f32 %v272_v56, %v85_v55  ;;  %vm93_vm0 = vweird.f32 %v272_v56 }
  0xc3   :  { %vm94_vm2 = vmor %vm92_vm1, %vm93_vm0 }
  0xc4   :  { %v88_v58 = vmul.f32 %v272_v56, %v87_v57 }
  0xc6   :  { %v89_v59 = vmul.f32 0.5, %v88_v58 }
  0xc8   :  { %v90_v60 = vsub.f32 1.5, %v89_v59 }
  0xca   :  { %v91_v61 = vmul.f32 %v272_v56, %v90_v60 }
  0xcc   :  { %v95_v62 = vsel %vm94_vm2, %v272_v56, %v91_v61 }
  0xcd   :  { %v96_v63 = vmul.f32 %v95_v62, %v328_v24 }
  0xcf   :  { %v97_v0 = vmul.f32 %v96_v63, %v73_v50  ;;  %v102_v2 = vperm.slane %v96_v63, 1  ;;  %v222_v50 = vld [vmem:[#allocation2 + $0x120] sm:$0xff] }
  0xd1   :  { %v99_v1 = vrot.slane %v97_v0, 7  ;;  %v103_v4 = vmul.f32 %v102_v2, %v65_v30  ;;  %v230_v30 = vld [vmem:[#allocation2 + $0x160] sm:$0xff] }
  0xd2   :  { %246 = vmatpush.msra.mxu3 %v230_v30 }
  0xd3   :  { %v101_v3 = vsub.f32 %v328_v24, %v99_v1 }
  0xd4   :  { %247 = vmatpush.msra.mxu3 %v229_v32 }
  0xd5   :  { %v104_v5 = vperm.slane %v101_v3, 2 }
  0xd6   :  { %248 = vmatpush.msra.mxu3 %v228_v33 }
  0xd7   :  { %v105_v6 = vadd.f32 %v104_v5, %v103_v4 }
  0xd8   :  { %249 = vmatpush.msra.mxu3 %v227_v36 }
  0xd9   :  { %v106_v7 = vmax.f32 %v105_v6, 0.0 }
  0xda   :  { %250 = vmatpush.msra.mxu3 %v226_v39 }
  0xdb   :  { %140 = vmatmul.f32.vlgmr.msra.gmra.mxu1 %v106_v7 }
  0xdc   :  { %251 = vmatpush.msra.mxu3 %v225_v42 }
  0xde   :  { %252 = vmatpush.msra.mxu3 %v224_v45 }
  0xe0   :  { %253 = vmatpush.msra.mxu3 %v223_v48 }
  0xe2   :  { %254 = vmatpush.msra.mxu3 %v222_v50 }
 0x158   :  { %v141_v10 = vpop.f32.mrf.mxu1 }
 0x159   :  { %v142_v11 = vadd.f32 %v141_v10, %v123_v9 }
 0x15b   :  { %v144_v12 = vmul.f32 0.5, %v142_v11  ;;  %260 = vst [vmem:[%s349_s2 + $0x8] sm:$0xff] %v142_v11 }
 0x15d   :  { %v145_v13 = vmul.f32 1.442695, %v144_v12 }
 0x15f   :  { %273 = vpow2.f32 %v145_v13  ;;  %v238_v13 = vperm.slane %v328_v24, 7 }
 0x165   :  { %v274_v14 = vpop.eup %273 }
 0x166   :  { %148 = vrot.lane.b32.xlu0 %v274_v14, %s306_s19 }
 0x1d8   :  { %v149_v19 = vpop.permute.xlu0 %148 }
 0x1d9   :  { %v151_v20 = vmul.f32 %v149_v19, %v28_v18 }
 0x1db   :  { %v152_v21 = vadd.f32 %v151_v20, %v142_v11 }
 0x1dd   :  { %266 = vmatmul.msk.f32.vlgmr.msra.gmra.mxu2 %vm158_vm3, %v152_v21 }
 0x260   :  { %v179_v34 = vpop.f32.mrf.mxu2 }
 0x261   :  { %v180_v35 = vadd.f32 %v179_v34, %v157_v31 }
 0x263   :  { %v182_v37 = vrot.slane %v180_v35, 4  ;;  %v189_v38 = vmul.f32 %v180_v35, %v180_v35 }
 0x265   :  { %v183_v40 = vadd.f32 %v182_v37, %v180_v35  ;;  %v190_v41 = vrot.slane %v189_v38, 4 }
 0x267   :  { %v184_v43 = vrot.slane %v183_v40, 2  ;;  %v191_v44 = vadd.f32 %v190_v41, %v189_v38 }
 0x269   :  { %v185_v46 = vadd.f32 %v184_v43, %v183_v40  ;;  %v192_v47 = vrot.slane %v191_v44, 2 }
 0x26b   :  { %v193_v49 = vadd.f32 %v192_v47, %v191_v44  ;;  %v186_v51 = vrot.slane %v185_v46, 1 }
 0x26d   :  { %v194_v52 = vrot.slane %v193_v49, 1  ;;  %v187_v53 = vadd.f32 %v186_v51, %v185_v46 }
 0x26f   :  { %v195_v54 = vadd.f32 %v194_v52, %v193_v49  ;;  %v188_v55 = vmul.f32 0.125, %v187_v53 }
 0x271   :  { %v196_v56 = vmul.f32 0.125, %v195_v54  ;;  %v197_v57 = vmul.f32 %v188_v55, %v188_v55 }
 0x273   :  { %v198_v58 = vsub.f32 %v196_v56, %v197_v57 }
 0x275   :  { %v199_v59 = vmax.f32 %v198_v58, 0.0 }
 0x277   :  { %v200_v60 = vadd.f32 1e-05, %v199_v59 }
 0x279   :  { %275 = vrsqrt.f32 %v200_v60  ;;  %vm207_vm5 = vweird.f32 %v200_v60 }
 0x27f   :  { %v276_v61 = vpop.eup %275 }
 0x280   :  { %v202_v62 = vmul.f32 %v276_v61, %v200_v60  ;;  %vm208_vm4 = vweird.f32 %v276_v61 }
 0x281   :  { %vm209_vm6 = vmor %vm207_vm5, %vm208_vm4 }
 0x282   :  { %v203_v63 = vmul.f32 %v276_v61, %v202_v62 }
 0x284   :  { %v204_v0 = vmul.f32 0.5, %v203_v63 }
 0x286   :  { %v205_v1 = vsub.f32 1.5, %v204_v0 }
 0x288   :  { %v206_v2 = vmul.f32 %v276_v61, %v205_v1 }
 0x28a   :  { %v210_v3 = vsel %vm209_vm6, %v276_v61, %v206_v2 }
 0x28b   :  { %v211_v4 = vmul.f32 %v210_v3, %v328_v24 }
 0x28d   :  { %v212_v5 = vmul.f32 %v211_v4, %v188_v55  ;;  %v217_v7 = vperm.slane %v211_v4, 5 }
 0x28f   :  { %v214_v6 = vrot.slane %v212_v5, 7  ;;  %v218_v9 = vmul.f32 %v217_v7, %v180_v35 }
 0x291   :  { %v216_v8 = vsub.f32 %v328_v24, %v214_v6 }
 0x293   :  { %v219_v10 = vperm.slane %v216_v8, 6 }
 0x295   :  { %v220_v11 = vadd.f32 %v219_v10, %v218_v9 }
 0x297   :  { %v221_v12 = vmax.f32 %v220_v11, 0.0 }
 0x299   :  { %255 = vmatmul.f32.vlgmr.msra.gmra.mxu3 %v221_v12 }
 0x31c   :  { %v256_v14 = vpop.f32.mrf.mxu3 }
 0x31d   :  { %v257_v15 = vadd.f32 %v256_v14, %v238_v13 }
 0x31f   :  { %259 = vst [vmem:[%s349_s2] sm:$0xff] %v257_v15 }
 0x320   :  { %265 = vsyncpa [#allocation3], 1 }

</bundles_post_ra>
